<compile_context>
chip_gen: v7x
topology: tpu7x:2x2x1
jax: 0.10.0
libtpu: 0.0.40
codegen_flags: <defaults>
</compile_context>

<pallas_src>
import functools

import jax
import jax.numpy as jnp
from jax import lax
from jax.experimental import pallas as pl
from jax.experimental.pallas import tpu as pltpu


def _concat_dwconv_kernel(x_ref, w1_ref, wd_ref, mask_ref, o_ref, *,
                          n_feat_x, width, hw):
    """One batch element per grid step.

    x_ref   : (1, C, HWp)  input (channels on sublanes, spatial lane-dense)
    w1_ref  : (Cx, C)      1x1 conv weight
    wd_ref  : (Cx, 9)      depthwise 3x3 taps, tap index = kh*3 + kw on lanes
    mask_ref: (4, HWp)     f32 boundary masks [col>=1, col<=W-2, row>=1, row<=H-2]
    o_ref   : (1, C, HWp)  output
    """
    Cx = n_feat_x
    W = width
    HW = hw                                         # padded flattened length
    C = x_ref.shape[1]

    x = x_ref[0]                                    # (C, HW)

    # ---- 1x1 conv across channels: (Cx, C) @ (C, HW) on the MXU ------------
    y = jnp.dot(w1_ref[...], x, preferred_element_type=jnp.float32)   # (Cx, HW)

    # ---- precomputed f32 boundary masks (built once in the wrapper) --------
    m_l = mask_ref[0:1, :]                          # col >= 1
    m_r = mask_ref[1:2, :]                          # col <= W-2
    m_u = mask_ref[2:3, :]                          # row >= 1
    m_d = mask_ref[3:4, :]                          # row <= H-2

    # ---- separable depthwise 3x3 (zero pad 1): 4 rolls + 4 mask muls --------
    # Horizontal neighbors (XLU lane rotations), column masks folded in.
    ym1 = pltpu.roll(y, shift=1, axis=1) * m_l      # y[h, w-1]
    yp1 = pltpu.roll(y, shift=HW - 1, axis=1) * m_r  # y[h, w+1]

    w = wd_ref[...]                                 # (Cx, 9)

    def tap(k):                                     # (Cx, 1), lane-broadcasts
        return w[:, k:k + 1]

    # Per-kernel-row combos (weights of kernel row kh over horizontal taps).
    t_top = tap(0) * ym1 + tap(1) * y + tap(2) * yp1   # kh = 0
    t_mid = tap(3) * ym1 + tap(4) * y + tap(5) * yp1   # kh = 1 (center)
    t_bot = tap(6) * ym1 + tap(7) * y + tap(8) * yp1   # kh = 2

    # Vertical gather (2 more rotations) with row masks; acc starts at center.
    acc = t_mid
    acc = acc + pltpu.roll(t_top, shift=W, axis=1) * m_u       # reads row h-1
    acc = acc + pltpu.roll(t_bot, shift=HW - W, axis=1) * m_d  # reads row h+1

    # ---- write: conv result into [0:Cx], z passthrough (same layout) --------
    o_ref[0, :Cx, :] = acc.astype(o_ref.dtype)
    if C > Cx:
        o_ref[0, Cx:, :] = x_ref[0, Cx:, :]


@functools.partial(jax.jit, static_argnames=("n_feat_x",))
def concat_dwconv(x_nchw, w1, wd, *, n_feat_x):
    """ConcatDwConv forward.

    x_nchw: (N, Cx+Cz, H, W)
    w1    : (Cx, Cx+Cz)   1x1 conv weight (bias=False)
    wd    : (Cx, 3, 3)    depthwise 3x3 weight (bias=False)
    """
    N, C, H, W = x_nchw.shape
    Cx = n_feat_x
    HW = H * W
    HWp = ((HW + 127) // 128) * 128                  # lane-dense spatial length

    # Free contiguous reshape (no transposes); pad tail for lane density.
    x2 = x_nchw.reshape(N, C, HW)
    if HWp != HW:
        x2 = jnp.pad(x2, ((0, 0), (0, 0), (0, HWp - HW)))

    # Depthwise taps on the lane axis: one (8,128)-padded tile total.
    wd2 = wd.reshape(Cx, 9)

    # Precomputed f32 boundary masks (left, right, up, down), padded with 0.
    col = jnp.tile(jnp.arange(W, dtype=jnp.int32), H)
    row = jnp.repeat(jnp.arange(H, dtype=jnp.int32), W)
    masks = jnp.stack(
        [col >= 1, col <= W - 2, row >= 1, row <= H - 2], axis=0
    ).astype(jnp.float32)                            # (4, HW)
    if HWp != HW:
        masks = jnp.pad(masks, ((0, 0), (0, HWp - HW)))

    kernel = functools.partial(
        _concat_dwconv_kernel, n_feat_x=Cx, width=W, hw=HWp)

    # VMEM budget: double-buffered in+out blocks plus f32 temps.  Capped at
    # 32 MiB so the same configuration ports to v7x's 64 MiB VMEM.
    block_bytes = C * HWp * x_nchw.dtype.itemsize
    est = 4 * block_bytes + 12 * Cx * HWp * 4 + (1 << 20)
    vmem_limit = int(min(32 * 1024 * 1024, max(16 * 1024 * 1024, 2 * est)))

    out = pl.pallas_call(
        kernel,
        out_shape=jax.ShapeDtypeStruct((N, C, HWp), x_nchw.dtype),
        grid_spec=pltpu.PrefetchScalarGridSpec(
            num_scalar_prefetch=0,
            grid=(N,),
            in_specs=[
                pl.BlockSpec((1, C, HWp), lambda n: (n, 0, 0)),
                pl.BlockSpec((Cx, C), lambda n: (0, 0)),
                pl.BlockSpec((Cx, 9), lambda n: (0, 0)),
                pl.BlockSpec((4, HWp), lambda n: (0, 0)),
            ],
            out_specs=pl.BlockSpec((1, C, HWp), lambda n: (n, 0, 0)),
        ),
        compiler_params=pltpu.CompilerParams(
            dimension_semantics=("parallel",),
            vmem_limit_bytes=vmem_limit),
    )(x2, w1, wd2, masks)

    if HWp != HW:
        out = out[:, :, :HW]
    return out.reshape(N, C, H, W)


def _reference(x_nchw, w1, wd, n_feat_x):
    """Pure-JAX reference matching the PyTorch module (NCHW)."""
    Cx = n_feat_x
    z = x_nchw[:, Cx:]
    y = lax.conv_general_dilated(
        x_nchw, w1[:, :, None, None], window_strides=(1, 1), padding="VALID",
        dimension_numbers=("NCHW", "OIHW", "NCHW"))
    out = lax.conv_general_dilated(
        y, wd[:, None, :, :], window_strides=(1, 1),
        padding=((1, 1), (1, 1)),
        dimension_numbers=("NCHW", "OIHW", "NCHW"),
        feature_group_count=Cx)
    return jnp.concatenate([out, z], axis=1)


if __name__ == "__main__":
    n_feat_x, n_feat_z = 4, 4
    N, H, W = 2, 16, 16
    C = n_feat_x + n_feat_z

    key = jax.random.PRNGKey(0)
    kx, k1, k2 = jax.random.split(key, 3)

    x = jax.random.normal(kx, (N, C, H, W), dtype=jnp.float32)
    # Deterministic synthetic weights (bias=False in the module).
    w1 = jax.random.normal(k1, (n_feat_x, C), dtype=jnp.float32) * 0.1     # 1x1 conv
    wd = jax.random.normal(k2, (n_feat_x, 3, 3), dtype=jnp.float32) * 0.1  # dw 3x3

    out = concat_dwconv(x, w1, wd, n_feat_x=n_feat_x)
    out = jax.block_until_ready(out)

    ref = _reference(x, w1, wd, n_feat_x)
    assert out.shape == (N, C, H, W)
    assert jnp.allclose(out, ref, atol=1e-4, rtol=1e-4)

    print("KERNEL_OK")
</pallas_src>

<mosaic_0001>
module attributes {stable_mosaic.version = 11 : i64} {
  func.func @_concat_dwconv_kernel(%arg0: i32, %arg1: memref<1x8x256xf32, #tpu.memory_space<vmem>>, %arg2: memref<4x8xf32, #tpu.memory_space<vmem>>, %arg3: memref<4x9xf32, #tpu.memory_space<vmem>>, %arg4: memref<4x256xf32, #tpu.memory_space<vmem>>, %arg5: memref<1x8x256xf32, #tpu.memory_space<vmem>>) attributes {dimension_semantics = [#tpu.dimension_semantics<parallel>], iteration_bounds = array<i64: 2>, scalar_prefetch = 0 : i64, scratch_operands = 0 : i64, tpu.core_type = #tpu.core_type<tc>, window_params = [{transform_indices = @transform_0, window_bounds = array<i64: 1, 8, 256>}, {pipeline_mode = #tpu.pipeline_mode<synchronous>, transform_indices = @transform_1, window_bounds = array<i64: 4, 8>}, {pipeline_mode = #tpu.pipeline_mode<synchronous>, transform_indices = @transform_2, window_bounds = array<i64: 4, 9>}, {pipeline_mode = #tpu.pipeline_mode<synchronous>, transform_indices = @transform_3, window_bounds = array<i64: 4, 256>}, {transform_indices = @transform_4, window_bounds = array<i64: 1, 8, 256>}]} {
    %c0 = arith.constant 0 : index
    %c0_0 = arith.constant 0 : index
    %c0_1 = arith.constant 0 : index
    %0 = vector.load %arg1[%c0, %c0_0, %c0_1] : memref<1x8x256xf32, #tpu.memory_space<vmem>>, vector<1x8x256xf32>
    %1 = vector.shape_cast %0 : vector<1x8x256xf32> to vector<8x256xf32>
    %c0_2 = arith.constant 0 : index
    %c0_3 = arith.constant 0 : index
    %2 = vector.load %arg2[%c0_2, %c0_3] : memref<4x8xf32, #tpu.memory_space<vmem>>, vector<4x8xf32>
    %cst = arith.constant dense<0.000000e+00> : vector<4x256xf32>
    %3 = tpu.matmul %2, %1, %cst {dimension_numbers = #tpu.dot_dimension_numbers<[1], [0], [0], [1], [0, 0, 1, 1], [], []>} : vector<4x8xf32>, vector<8x256xf32>, vector<4x256xf32> -> vector<4x256xf32>
    %c0_4 = arith.constant 0 : index
    %c0_5 = arith.constant 0 : index
    %4 = vector.load %arg4[%c0_4, %c0_5] : memref<4x256xf32, #tpu.memory_space<vmem>>, vector<1x256xf32>
    %c1 = arith.constant 1 : index
    %c0_6 = arith.constant 0 : index
    %5 = vector.load %arg4[%c1, %c0_6] : memref<4x256xf32, #tpu.memory_space<vmem>>, vector<1x256xf32>
    %c2 = arith.constant 2 : index
    %c0_7 = arith.constant 0 : index
    %6 = vector.load %arg4[%c2, %c0_7] : memref<4x256xf32, #tpu.memory_space<vmem>>, vector<1x256xf32>
    %c3 = arith.constant 3 : index
    %c0_8 = arith.constant 0 : index
    %7 = vector.load %arg4[%c3, %c0_8] : memref<4x256xf32, #tpu.memory_space<vmem>>, vector<1x256xf32>
    %c1_i32 = arith.constant 1 : i32
    %8 = tpu.dynamic_rotate %3 by %c1_i32 dim 1 : vector<4x256xf32>, i32 -> vector<4x256xf32>
    %9 = vector.broadcast %4 : vector<1x256xf32> to vector<4x256xf32>
    %10 = arith.mulf %8, %9 : vector<4x256xf32>
    %c255_i32 = arith.constant 255 : i32
    %11 = tpu.dynamic_rotate %3 by %c255_i32 dim 1 : vector<4x256xf32>, i32 -> vector<4x256xf32>
    %12 = vector.broadcast %5 : vector<1x256xf32> to vector<4x256xf32>
    %13 = arith.mulf %11, %12 : vector<4x256xf32>
    %c0_9 = arith.constant 0 : index
    %c0_10 = arith.constant 0 : index
    %14 = vector.load %arg3[%c0_9, %c0_10] : memref<4x9xf32, #tpu.memory_space<vmem>>, vector<4x9xf32>
    %15 = vector.extract_strided_slice %14 {offsets = [0, 0], sizes = [4, 1], strides = [1, 1]} : vector<4x9xf32> to vector<4x1xf32>
    %16 = vector.broadcast %15 : vector<4x1xf32> to vector<4x256xf32>
    %17 = arith.mulf %16, %10 : vector<4x256xf32>
    %18 = vector.extract_strided_slice %14 {offsets = [0, 1], sizes = [4, 1], strides = [1, 1]} : vector<4x9xf32> to vector<4x1xf32>
    %19 = vector.broadcast %18 : vector<4x1xf32> to vector<4x256xf32>
    %20 = arith.mulf %19, %3 : vector<4x256xf32>
    %21 = arith.addf %17, %20 : vector<4x256xf32>
    %22 = vector.extract_strided_slice %14 {offsets = [0, 2], sizes = [4, 1], strides = [1, 1]} : vector<4x9xf32> to vector<4x1xf32>
    %23 = vector.broadcast %22 : vector<4x1xf32> to vector<4x256xf32>
    %24 = arith.mulf %23, %13 : vector<4x256xf32>
    %25 = arith.addf %21, %24 : vector<4x256xf32>
    %26 = vector.extract_strided_slice %14 {offsets = [0, 3], sizes = [4, 1], strides = [1, 1]} : vector<4x9xf32> to vector<4x1xf32>
    %27 = vector.broadcast %26 : vector<4x1xf32> to vector<4x256xf32>
    %28 = arith.mulf %27, %10 : vector<4x256xf32>
    %29 = vector.extract_strided_slice %14 {offsets = [0, 4], sizes = [4, 1], strides = [1, 1]} : vector<4x9xf32> to vector<4x1xf32>
    %30 = vector.broadcast %29 : vector<4x1xf32> to vector<4x256xf32>
    %31 = arith.mulf %30, %3 : vector<4x256xf32>
    %32 = arith.addf %28, %31 : vector<4x256xf32>
    %33 = vector.extract_strided_slice %14 {offsets = [0, 5], sizes = [4, 1], strides = [1, 1]} : vector<4x9xf32> to vector<4x1xf32>
    %34 = vector.broadcast %33 : vector<4x1xf32> to vector<4x256xf32>
    %35 = arith.mulf %34, %13 : vector<4x256xf32>
    %36 = arith.addf %32, %35 : vector<4x256xf32>
    %37 = vector.extract_strided_slice %14 {offsets = [0, 6], sizes = [4, 1], strides = [1, 1]} : vector<4x9xf32> to vector<4x1xf32>
    %38 = vector.broadcast %37 : vector<4x1xf32> to vector<4x256xf32>
    %39 = arith.mulf %38, %10 : vector<4x256xf32>
    %40 = vector.extract_strided_slice %14 {offsets = [0, 7], sizes = [4, 1], strides = [1, 1]} : vector<4x9xf32> to vector<4x1xf32>
    %41 = vector.broadcast %40 : vector<4x1xf32> to vector<4x256xf32>
    %42 = arith.mulf %41, %3 : vector<4x256xf32>
    %43 = arith.addf %39, %42 : vector<4x256xf32>
    %44 = vector.extract_strided_slice %14 {offsets = [0, 8], sizes = [4, 1], strides = [1, 1]} : vector<4x9xf32> to vector<4x1xf32>
    %45 = vector.broadcast %44 : vector<4x1xf32> to vector<4x256xf32>
    %46 = arith.mulf %45, %13 : vector<4x256xf32>
    %47 = arith.addf %43, %46 : vector<4x256xf32>
    %c16_i32 = arith.constant 16 : i32
    %48 = tpu.dynamic_rotate %25 by %c16_i32 dim 1 : vector<4x256xf32>, i32 -> vector<4x256xf32>
    %49 = vector.broadcast %6 : vector<1x256xf32> to vector<4x256xf32>
    %50 = arith.mulf %48, %49 : vector<4x256xf32>
    %51 = arith.addf %36, %50 : vector<4x256xf32>
    %c240_i32 = arith.constant 240 : i32
    %52 = tpu.dynamic_rotate %47 by %c240_i32 dim 1 : vector<4x256xf32>, i32 -> vector<4x256xf32>
    %53 = vector.broadcast %7 : vector<1x256xf32> to vector<4x256xf32>
    %54 = arith.mulf %52, %53 : vector<4x256xf32>
    %55 = arith.addf %51, %54 : vector<4x256xf32>
    %c0_11 = arith.constant 0 : index
    %c0_12 = arith.constant 0 : index
    %c0_13 = arith.constant 0 : index
    %56 = vector.load %arg5[%c0_11, %c0_12, %c0_13] : memref<1x8x256xf32, #tpu.memory_space<vmem>>, vector<1x4x256xf32>
    %57 = vector.shape_cast %56 : vector<1x4x256xf32> to vector<4x256xf32>
    %58 = vector.shape_cast %55 : vector<4x256xf32> to vector<1x4x256xf32>
    tpu.vector_store %arg5[%c0_11, %c0_12, %c0_13], %58 {strides = array<i32>} : memref<1x8x256xf32, #tpu.memory_space<vmem>>, vector<1x4x256xf32>,
    %c0_14 = arith.constant 0 : index
    %c4 = arith.constant 4 : index
    %c0_15 = arith.constant 0 : index
    %59 = vector.load %arg1[%c0_14, %c4, %c0_15] : memref<1x8x256xf32, #tpu.memory_space<vmem>>, vector<1x4x256xf32>
    %60 = vector.shape_cast %59 : vector<1x4x256xf32> to vector<4x256xf32>
    %c0_16 = arith.constant 0 : index
    %c4_17 = arith.constant 4 : index
    %c0_18 = arith.constant 0 : index
    %61 = vector.load %arg5[%c0_16, %c4_17, %c0_18] : memref<1x8x256xf32, #tpu.memory_space<vmem>>, vector<1x4x256xf32>
    %62 = vector.shape_cast %61 : vector<1x4x256xf32> to vector<4x256xf32>
    %63 = vector.shape_cast %60 : vector<4x256xf32> to vector<1x4x256xf32>
    tpu.vector_store %arg5[%c0_16, %c4_17, %c0_18], %63 {strides = array<i32>} : memref<1x8x256xf32, #tpu.memory_space<vmem>>, vector<1x4x256xf32>,
    return
  }
  func.func @transform_0(%arg0: i32) -> (i32, i32, i32) {
    %c0_i32 = arith.constant 0 : i32
    %c0_i32_0 = arith.constant 0 : i32
    %c0_i32_1 = arith.constant 0 : i32
    return %arg0, %c0_i32, %c0_i32_0 : i32, i32, i32
  }
  func.func @transform_1(%arg0: i32) -> (i32, i32) {
    %c0_i32 = arith.constant 0 : i32
    %c0_i32_0 = arith.constant 0 : i32
    %c0_i32_1 = arith.constant 0 : i32
    return %c0_i32, %c0_i32_0 : i32, i32
  }
  func.func @transform_2(%arg0: i32) -> (i32, i32) {
    %c0_i32 = arith.constant 0 : i32
    %c0_i32_0 = arith.constant 0 : i32
    %c0_i32_1 = arith.constant 0 : i32
    return %c0_i32, %c0_i32_0 : i32, i32
  }
  func.func @transform_3(%arg0: i32) -> (i32, i32) {
    %c0_i32 = arith.constant 0 : i32
    %c0_i32_0 = arith.constant 0 : i32
    %c0_i32_1 = arith.constant 0 : i32
    return %c0_i32, %c0_i32_0 : i32, i32
  }
  func.func @transform_4(%arg0: i32) -> (i32, i32, i32) {
    %c0_i32 = arith.constant 0 : i32
    %c0_i32_0 = arith.constant 0 : i32
    %c0_i32_1 = arith.constant 0 : i32
    return %arg0, %c0_i32, %c0_i32_0 : i32, i32, i32
  }
}

</mosaic_0001>

<bundles_post_ra>
// kernel: concat_dwconv.1
= control target key start
LH: loop header
LB: loop body
LE: loop exit
PB: predicated region body
PF: predicated region fallthrough
CT: control target
= control target key end

     0   :  { %s594_s15 = smov 0   ;;  %s667_s0 = inlined_call_operand.vmem [shape: f32[2,8,256], index: 0, kind: input, shape index: {}]   ;;  %s668_s1 = inlined_call_operand.vmem [shape: f32[4,8], index: 1, kind: input, shape index: {}]   ;;  %s669_s2 = inlined_call_operand.vmem [shape: f32[4,9], index: 2, kind: input, shape index: {}]   ;;  %s670_s3 = inlined_call_operand.vmem [shape: f32[4,256], index: 3, kind: input, shape index: {}]   ;;  %s671_s4 = inlined_call_operand.vmem [shape: f32[2,8,256], index: 4, kind: output, shape index: {}]  }
   0x1 LB: > { %s498_s16 = sadd.s32 4294967295, %s553_s15   ;;  %p502_p0 = scmp.ge.s32.totalorder %s553_s15, 1  ;;  %s553_s15 = sphi %s594_s15, %s14_s15  }
   0x2   : > { %p162_p1 = scmp.lt.s32.totalorder %s553_s15, 3 }
   0x4   : > { %p163_p2 = pnand %p502_p0, %p162_p1 }
   0x5   : > { %p188_p3 = scmp.lt.s32.totalorder (!%p163_p2), %s498_s16, 1  ;;  %v555_v0 = vmov (!%p163_p2), 0.0   ;;  %v556_v1 = vmov (!%p163_p2), 2   ;;  %v325_v2 = vld [vmem:[%s669_s2] sm:$0xf] (!%p163_p2)  ;;  %v557_v3 = vmov (!%p163_p2), 0   ;;  %v287_v20 = vlaneseq (!%p163_p2) }
   0x6   : > { %166 = sbr.rel (%p163_p2) target bundleno = 488 (0x1e8), region = 36  ;;  %269 = vmatprep.mubr.f32.mxu0 (!%p163_p2), %v555_v0  ;;  %539 = vset.pattern.permute.xlu1 (!%p163_p2), %v556_v1  ;;  %v200_v4 = vld [vmem:[%s668_s1] sm:$0xf] (!%p163_p2)  ;;  %vm201_vm0 = vcmask (!%p163_p2), 64512   ;;  %v558_v8 = vmov (!%p163_p2), 6   ;;  %v559_v10 = vmov (!%p163_p2), 1  }
   0x7   : > { %342 = vperm.xlu1 (!%p163_p2), %539, %v325_v2   ;;  %537 = vset.pattern.permute.xlu0 (!%p163_p2), %v557_v3  ;;  %v560_v11 = vmov (!%p163_p2), 7   ;;  %v561_v12 = vmov (!%p163_p2), 8   ;;  %v562_v13 = vmov (!%p163_p2), 4   ;;  %s563_s28 = smov (!%p163_p2), 127   ;;  %s564_s29 = smov (!%p163_p2), 1   ;;  %v565_v16 = vmov (!%p163_p2), 3  }
   0x8   : > { %328 = vperm.xlu0 (!%p163_p2), %537, %v325_v2   ;;  %v566_v17 = vmov (!%p163_p2), 5   ;;  %v294_v22 = vshrl.u32 (!%p163_p2), %v287_v20, 7  ;;  %v626_v24 = vand.u32 (!%p163_p2), 127, %v287_v20  ;;  %v276_v27 = vld [vmem:[%s670_s3] ss:$4 sm:$0x3] (!%p163_p2) }
   0x9   : > { %v508_v32 = vld [vmem:[%s670_s3 + $0x1] ss:$4 sm:$0x3] (!%p163_p2)  ;;  %s567_s8 = smov (!%p163_p2), 16   ;;  %s568_s9 = smov (!%p163_p2), 112  }
   0xa   : > { %v628_v25 = vsub.s32 (!%p163_p2), 0, %v294_v22  ;;  %v630_v26 = vsub.s32 (!%p163_p2), 1, %v294_v22  ;;  %vm289_vm1 = vcmp.lt.s32.totalorder (!%p163_p2), %v626_v24, 1  ;;  %vm309_vm2 = vcmp.lt.s32.totalorder (!%p163_p2), %v626_v24, 127 }
   0xb   : > { %540 = vset.pattern.permute.xlu1 (!%p163_p2), %v558_v8  ;;  %vm397_vm3 = vcmp.lt.s32.totalorder (!%p163_p2), %v626_v24, 16  ;;  %vm419_vm4 = vcmp.lt.s32.totalorder (!%p163_p2), %v626_v24, 112 }
   0xc   : > { %372 = vperm.xlu1 (!%p163_p2), %540, %v325_v2   ;;  %538 = vset.pattern.permute.xlu0 (!%p163_p2), %v559_v10  ;;  %v296_v30 = vrot.slane (!%p163_p2), %v276_v27, %v628_v25  ;;  %v300_v31 = vrot.slane (!%p163_p2), %v276_v27, %v630_v26  ;;  %v316_v39 = vrot.slane (!%p163_p2), %v508_v32, %v628_v25 }
   0xd   : > { %s673_s16 = smov (!%p188_p3, %s498_s16), 1  ;;  %334 = vperm.xlu0 %538, %v325_v2   ;;  %v320_v40 = vrot.slane %v508_v32, %v630_v26 }
   0xe   : > { %s513_s19 = sshll.u32 %s673_s16, 4 }
   0xf   : > { %s192_s22 = scalar_lea.vmem %s667_s0, %s513_s19  ;;  %s611_s25 = scalar_lea.vmem %s671_s4, %s513_s19 }
  0x10   : > { %v199_v5 = vld [vmem:[%s192_s22 + $0x8] sm:$0xff]  ;;  %v439_v6 = vld [vmem:[%s192_s22] sm:$0xf0]  ;;  %541 = vset.pattern.permute.xlu1 %v560_v11 }
  0x11   : > { %v440_v7 = vld [vmem:[%s192_s22 + $0x8] sm:$0xf0]  ;;  %205 = vmatprep.subr.mxu0 %v199_v5  ;;  %441 = vst [vmem:[%s611_s25] sm:$0xf0] %v439_v6  ;;  %v198_v9 = vld [vmem:[%s192_s22] sm:$0xff]  ;;  %378 = vperm.xlu1 %541, %v325_v2  }
  0x12   : > { %442 = vst [vmem:[%s611_s25 + $0x8] sm:$0xf0] %v440_v7  ;;  %206 = vmatpush1.msra.mxu0 %v198_v9  ;;  %542 = vset.pattern.permute.xlu0 %v561_v12 }
  0x13   : > { %507 = vmatmul.mubr.msk.f32.vlgmr.msra.gmra.mrb[0].mxu0 %vm201_vm0, %v200_v4 }
  0x15   : > { %544 = vset.pattern.permute.xlu1 %v562_v13 }
  0x86   : > { %v343_v18 = vpop.permute.xlu1 %342 }
  0x87   : > { %v329_v21 = vpop.permute.xlu0 %328 }
  0x8b   : > { %v373_v19 = vpop.permute.xlu1 %372 }
  0x8c   : > { %v335_v28 = vpop.permute.xlu0 %334 }
  0x90   : > { %v379_v23 = vpop.permute.xlu1 %378 }
  0xe6   : > { %v618_v14 = vpop.f32.mrb[0].mxu0 }
  0xe7   : > { %305 = vrot.lane.b32.xlu1 %v618_v14, %s563_s28  ;;  %283 = vrot.lane.b32.xlu0 %v618_v14, %s564_s29  ;;  %v622_v15 = vpop.f32.mrb[1].mxu0  ;;  %v337_v49 = vmul.f32 %v335_v28, %v618_v14  ;;  %v381_v59 = vmul.f32 %v379_v23, %v618_v14 }
  0xe8   : > { %v338_v46 = vmul.f32 %v335_v28, %v622_v15  ;;  %v382_v58 = vmul.f32 %v379_v23, %v622_v15  ;;  %v510_v23 = vld [vmem:[%s670_s3 + $0x3] ss:$4 sm:$0x3] }
  0xeb   : > { %386 = vperm.xlu0 %542, %v325_v2   ;;  %285 = vrot.lane.b32.xlu1 %v622_v15, %s564_s29 }
  0xef   : > { %543 = vset.pattern.permute.xlu0 %v565_v16  ;;  %307 = vrot.lane.b32.xlu1 %v622_v15, %s563_s28 }
  0xf0   : > { %350 = vperm.xlu0 %543, %v325_v2  }
  0xf3   : > { %356 = vperm.xlu1 %544, %v325_v2  }
  0xf4   : > { %546 = vset.pattern.permute.xlu0 %v561_v12 }
  0xf7   : > { %545 = vset.pattern.permute.xlu1 %v566_v17 }
  0xf8   : > { %364 = vperm.xlu1 %545, %v325_v2  }
 0x159   : > { %v306_v29 = vpop.permute.xlu1 %305  ;;  %v284_v33 = vpop.permute.xlu0 %283 }
 0x15d   : > { %v286_v34 = vpop.permute.xlu1 %285 }
 0x15e   : > { %v290_v35 = vsel %vm289_vm1, %v284_v33, %v286_v34  ;;  %v291_v36 = vsel %vm289_vm1, %v286_v34, %v284_v33 }
 0x15f   : > { %v303_v37 = vmul.f32 %v296_v30, %v291_v36  ;;  %v304_v38 = vmul.f32 %v300_v31, %v290_v35  ;;  %v430_v30 = vrot.slane %v510_v23, %v630_v26 }
 0x161   : > { %v331_v41 = vmul.f32 %v329_v21, %v303_v37  ;;  %v332_v42 = vmul.f32 %v329_v21, %v304_v38  ;;  %v308_v43 = vpop.permute.xlu1 %307  ;;  %v375_v54 = vmul.f32 %v373_v19, %v303_v37  ;;  %v376_v55 = vmul.f32 %v373_v19, %v304_v38 }
 0x162   : > { %v310_v44 = vsel %vm309_vm2, %v306_v29, %v308_v43  ;;  %v311_v45 = vsel %vm309_vm2, %v308_v43, %v306_v29  ;;  %v426_v29 = vrot.slane %v510_v23, %v628_v25 }
 0x163   : > { %v323_v47 = vmul.f32 %v316_v39, %v310_v44  ;;  %v324_v48 = vmul.f32 %v320_v40, %v311_v45  ;;  %v339_v50 = vadd.f32 %v337_v49, %v331_v41  ;;  %v340_v52 = vadd.f32 %v338_v46, %v332_v42 }
 0x164   : > { %v383_v61 = vadd.f32 %v381_v59, %v375_v54  ;;  %v384_v62 = vadd.f32 %v382_v58, %v376_v55 }
 0x165   : > { %v345_v51 = vmul.f32 %v343_v18, %v323_v47  ;;  %v346_v53 = vmul.f32 %v343_v18, %v324_v48  ;;  %v509_v18 = vld [vmem:[%s670_s3 + $0x2] ss:$4 sm:$0x3] }
 0x166   : > { %v404_v20 = vrot.slane %v509_v18, %v628_v25 }
 0x167   : > { %v347_v56 = vadd.f32 %v345_v51, %v339_v50  ;;  %v348_v57 = vadd.f32 %v346_v53, %v340_v52 }
 0x169   : > { %393 = vrot.lane.b32.xlu0 %v347_v56, %s567_s8  ;;  %395 = vrot.lane.b32.xlu1 %v348_v57, %s567_s8 }
 0x16a   : > { %v387_v60 = vpop.permute.xlu0 %386 }
 0x16b   : > { %v389_v63 = vmul.f32 %v387_v60, %v323_v47  ;;  %v390_v0 = vmul.f32 %v387_v60, %v324_v48 }
 0x16d   : > { %v391_v1 = vadd.f32 %v389_v63, %v383_v61  ;;  %v392_v2 = vadd.f32 %v390_v0, %v384_v62 }
 0x16f   : > { %415 = vrot.lane.b32.xlu0 %v391_v1, %s568_s9  ;;  %417 = vrot.lane.b32.xlu1 %v392_v2, %s568_s9  ;;  %v351_v3 = vpop.permute.xlu0 %350 }
 0x170   : > { %v353_v5 = vmul.f32 %v351_v3, %v303_v37  ;;  %v354_v6 = vmul.f32 %v351_v3, %v304_v38 }
 0x172   : > { %v357_v4 = vpop.permute.xlu1 %356 }
 0x173   : > { %v359_v7 = vmul.f32 %v357_v4, %v618_v14  ;;  %v360_v8 = vmul.f32 %v357_v4, %v622_v15  ;;  %v408_v14 = vrot.slane %v509_v18, %v630_v26 }
 0x175   : > { %v361_v9 = vadd.f32 %v359_v7, %v353_v5  ;;  %v362_v10 = vadd.f32 %v360_v8, %v354_v6 }
 0x177   : > { %v365_v11 = vpop.permute.xlu1 %364 }
 0x178   : > { %v367_v12 = vmul.f32 %v365_v11, %v323_v47  ;;  %v368_v13 = vmul.f32 %v365_v11, %v324_v48 }
 0x17a   : > { %v369_v16 = vadd.f32 %v367_v12, %v361_v9  ;;  %v370_v17 = vadd.f32 %v368_v13, %v362_v10 }
 0x1db   : > { %v394_v19 = vpop.permute.xlu0 %393  ;;  %v396_v21 = vpop.permute.xlu1 %395 }
 0x1dc   : > { %v398_v15 = vsel %vm397_vm3, %v394_v19, %v396_v21  ;;  %v399_v22 = vsel %vm397_vm3, %v396_v21, %v394_v19 }
 0x1dd   : > { %v411_v27 = vmul.f32 %v404_v20, %v399_v22  ;;  %v412_v28 = vmul.f32 %v408_v14, %v398_v15 }
 0x1df   : > { %v413_v35 = vadd.f32 %v411_v27, %v369_v16  ;;  %v414_v36 = vadd.f32 %v412_v28, %v370_v17 }
 0x1e1   : > { %v416_v31 = vpop.permute.xlu0 %415  ;;  %v418_v32 = vpop.permute.xlu1 %417 }
 0x1e2   : > { %v420_v33 = vsel %vm419_vm4, %v416_v31, %v418_v32  ;;  %v421_v34 = vsel %vm419_vm4, %v418_v32, %v416_v31 }
 0x1e3   : > { %v433_v37 = vmul.f32 %v426_v29, %v420_v33  ;;  %v434_v38 = vmul.f32 %v430_v30, %v421_v34 }
 0x1e5   : > { %v435_v39 = vadd.f32 %v433_v37, %v413_v35  ;;  %v436_v40 = vadd.f32 %v434_v38, %v414_v36 }
 0x1e7   : > { %437 = vst [vmem:[%s611_s25] sm:$0xf] %v435_v39  ;;  %438 = vst [vmem:[%s611_s25 + $0x8] sm:$0xf] %v436_v40 }
 0x1e8 PF: > { %s14_s15 = sadd.s32 1, %s553_s15  }
 0x1e9   : > { %p11_p4 = scmp.ge.s32.totalorder %s14_s15, 4  }
 0x1eb   :  { %13 = sbr.rel (!%p11_p4) target bundleno = 1 (0x1), region = 69 }

</bundles_post_ra>
